<compile_context>
chip_gen: v6e
topology: v6e:2x2x1
jax: 0.10.0
libtpu: 0.0.40
codegen_flags: <defaults>
</compile_context>

<pallas_src>
import functools

import jax
import jax.numpy as jnp
from jax.experimental import pallas as pl
from jax.experimental.pallas import tpu as pltpu

BN_EPS = 1e-5
_LANES = 128


# ----------------------------------------------------------------------------
# parameter-slab layouts (static, derived from shapes only)
# ----------------------------------------------------------------------------
def _make_weight_layout(input_size, H, M):
    """Rows of the packed (rows, 128) bf16 weight slab (16-row aligned blocks)."""
    assert 2 * H <= _LANES, "hidden_size too large for single-tile lane packing"
    layout = {}
    r = 0

    def add(name, nrows, ncols):
        nonlocal r
        r = ((r + 15) // 16) * 16            # bf16 sublane-packing friendly
        layout[name] = (r, nrows, ncols)
        r += nrows

    add("fc_w", input_size, H)               # ParallelGaussian.fc
    add("fc1_w", H, H)                       # Gaussian.fc
    add("mv_w", H, 2 * H)                    # [mean_encoder | var_encoder]
    add("w_w", 3 * H, M)                     # Gaussian.weight  (mean|var|x rows)
    add("dec_w", 2 * H, 2 * M)               # block-diag(mean_decoder, var_decoder)
    total_rows = ((r + 15) // 16) * 16
    return layout, total_rows


def _make_vector_layout(H, M):
    """Rows of the packed (rows, 128) f32 per-feature-vector slab (1 row each)."""
    assert 3 * H <= _LANES, "hidden_size too large for single-row vector packing"
    layout = {}
    r = 0
    for name, n in (
        ("bn_g", H), ("bn_b", H),
        ("bn1_g", H), ("bn1_b", H),
        ("bn23_g", 2 * H), ("bn23_b", 2 * H),
        ("bn4_g", 3 * H), ("bn4_b", 3 * H),
        ("w_b", M), ("dec_b", 2 * M),
    ):
        layout[name] = (r, 1, n)
        r += 1
    total_rows = ((r + 7) // 8) * 8
    return layout, total_rows


def pack_params(params):
    """Pack module parameters into (bf16 weight slab, f32 vector slab). Do once."""
    f32 = jnp.float32
    input_size, H = params["fc_w"].shape
    M = params["md_b"].shape[-1]
    wl, wrows = _make_weight_layout(input_size, H, M)
    vl, vrows = _make_vector_layout(H, M)

    dec_w = jnp.zeros((2 * H, 2 * M), f32)
    dec_w = dec_w.at[:H, :M].set(params["md_w"]).at[H:, M:].set(params["vd_w"])

    w_entries = {
        "fc_w": params["fc_w"],
        "fc1_w": params["fc1_w"],
        "mv_w": jnp.concatenate([params["me_w"], params["ve_w"]], axis=1),
        "w_w": params["w_w"],
        "dec_w": dec_w,
    }
    v_entries = {
        "bn_g": params["bn_g"], "bn_b": params["bn_b"],
        "bn1_g": params["bn1_g"], "bn1_b": params["bn1_b"],
        "bn23_g": jnp.concatenate([params["bn2_g"], params["bn3_g"]], axis=1),
        "bn23_b": jnp.concatenate([params["bn2_b"], params["bn3_b"]], axis=1),
        "bn4_g": params["bn4_g"], "bn4_b": params["bn4_b"],
        "w_b": params["w_b"],
        # fold the "+1e-6" inside exp(var_decoder(.) + 1e-6) into the bias
        "dec_b": jnp.concatenate([params["md_b"], params["vd_b"] + 1e-6], axis=1),
    }
    # NOTE: fc_b / fc1_b / me_b / ve_b are intentionally omitted — they are
    # exactly cancelled by the training-mode BatchNorm mean subtraction.

    w_slab = jnp.zeros((wrows, _LANES), jnp.bfloat16)
    for name, arr in w_entries.items():
        r0, nr, nc = wl[name]
        w_slab = w_slab.at[r0:r0 + nr, :nc].set(
            jnp.asarray(arr, f32).reshape(nr, nc).astype(jnp.bfloat16))

    v_slab = jnp.zeros((vrows, _LANES), f32)
    for name, arr in v_entries.items():
        r0, nr, nc = vl[name]
        v_slab = v_slab.at[r0:r0 + nr, :nc].set(
            jnp.asarray(arr, f32).reshape(nr, nc))
    return w_slab, v_slab


# ----------------------------------------------------------------------------
# kernel
# ----------------------------------------------------------------------------
def _parallel_gaussian_kernel(wl, vl, M, inv_b, x_ref, w_ref, v_ref, out_ref):
    f32, bf16 = jnp.float32, jnp.bfloat16

    def wblk(name):
        r0, nr, nc = wl[name]
        return w_ref[r0:r0 + nr, 0:nc]               # bf16 MXU operand

    def vrow(name):
        r0, nr, nc = vl[name]
        return v_ref[r0:r0 + nr, 0:nc]               # f32 VPU operand

    def mxu(a_f32, wname):
        # bf16 x bf16 -> f32 accumulate: single-pass MXU on all generations.
        return jnp.dot(a_f32.astype(bf16), wblk(wname), preferred_element_type=f32)

    def bn(h, gname, bname, relu=True):
        # BatchNorm1d, training mode, one-pass stats: var = E[h^2] - mu^2.
        s1 = jnp.sum(h, axis=0, keepdims=True)
        s2 = jnp.sum(h * h, axis=0, keepdims=True)
        mu = s1 * inv_b
        var = s2 * inv_b - mu * mu
        scale = jax.lax.rsqrt(var + BN_EPS) * vrow(gname)
        out = (h - mu) * scale + vrow(bname)
        return jnp.maximum(out, 0.0) if relu else out

    x = x_ref[0].astype(f32)                          # (B, input_size)

    # ParallelGaussian trunk: relu(bn(fc(x)))   (linear bias cancelled by BN)
    h = bn(mxu(x, "fc_w"), "bn_g", "bn_b")
    # Gaussian trunk: relu(bn1(fc(.)))
    g = bn(mxu(h, "fc1_w"), "bn1_g", "bn1_b")
    # fused mean/var encoders + bn2|bn3 + relu  -> mv = [mean_h | var_h]
    mv = bn(mxu(g, "mv_w"), "bn23_g", "bn23_b")

    # bn4(cat(mean_h, var_h, x)) on one 96-lane tile, then a single head matmul
    y = bn(jnp.concatenate([mv, g], axis=1), "bn4_g", "bn4_b", relu=False)
    logits = mxu(y, "w_w") + vrow("w_b")              # "+1e-6" dropped (shift-inv.)
    logits = logits - jnp.max(logits, axis=1, keepdims=True)   # overflow guard
    e = jnp.exp(logits)
    weight = e / jnp.sum(e, axis=1, keepdims=True)    # exact divide: sums to 1

    # decoders: one block-diagonal matmul; var bias already holds the +1e-6
    dec = mxu(mv, "dec_w") + vrow("dec_b")            # (B, 2M) = [mean | var-arg]

    # sliced stores into the lane-merged output (no end-of-chain concatenate)
    out_ref[0, :, 0:M] = dec[:, 0:M]
    out_ref[0, :, M:2 * M] = jnp.exp(dec[:, M:2 * M])
    out_ref[0, :, 2 * M:3 * M] = weight


@functools.partial(jax.jit, static_argnames=("hidden_size", "mixture_num"))
def parallel_gaussian(x, w_slab, v_slab, hidden_size=32, mixture_num=3):
    """Forward pass. x: (B, input_size) or (N, B, input_size) stacked problems."""
    squeeze = x.ndim == 2
    if squeeze:
        x = x[None]
    N, B, input_size = x.shape
    H, M = hidden_size, mixture_num
    wl, wrows = _make_weight_layout(input_size, H, M)
    vl, vrows = _make_vector_layout(H, M)
    assert w_slab.shape == (wrows, _LANES) and v_slab.shape == (vrows, _LANES)

    kernel = functools.partial(_parallel_gaussian_kernel, wl, vl, M, 1.0 / B)

    flops = int(2 * N * B * (input_size * H + H * H + H * 2 * H + 3 * H * M + 2 * H * 2 * M))
    transcendentals = int(N * (2 * B * M + 7 * H))
    bytes_accessed = int(x.size * 4 + w_slab.size * 2 + v_slab.size * 4 + N * B * 3 * M * 4)

    out = pl.pallas_call(
        kernel,
        grid=(N,),
        out_shape=jax.ShapeDtypeStruct((N, B, 3 * M), jnp.float32),
        in_specs=[
            pl.BlockSpec((1, B, input_size), lambda i: (i, 0, 0)),
            pl.BlockSpec((wrows, _LANES), lambda i: (0, 0)),   # VMEM-resident slab
            pl.BlockSpec((vrows, _LANES), lambda i: (0, 0)),   # VMEM-resident slab
        ],
        out_specs=pl.BlockSpec((1, B, 3 * M), lambda i: (i, 0, 0)),
        compiler_params=pltpu.CompilerParams(dimension_semantics=("parallel",)),
        cost_estimate=pl.CostEstimate(flops=flops, transcendentals=transcendentals,
                                      bytes_accessed=bytes_accessed),
    )(x, w_slab, v_slab)

    mean, var, weight = out[..., :M], out[..., M:2 * M], out[..., 2 * M:]
    if squeeze:
        mean, var, weight = mean[0], var[0], weight[0]
    return mean, var, weight


# ----------------------------------------------------------------------------
# synthetic params + pure-JAX reference (full original math, incl. dead terms)
# ----------------------------------------------------------------------------
def init_params(key, input_size, hidden_size=32, mixture_num=3):
    ks = jax.random.split(key, 16)
    f32 = jnp.float32

    def lin(k, fan_in, fan_out):
        kw, kb = jax.random.split(k)
        bound = 1.0 / jnp.sqrt(fan_in)
        w = jax.random.uniform(kw, (fan_in, fan_out), f32, -bound, bound)
        b = jax.random.uniform(kb, (1, fan_out), f32, -bound, bound)
        return w, b

    H, M = hidden_size, mixture_num
    p = {}
    p["fc_w"], p["fc_b"] = lin(ks[0], input_size, H)
    p["fc1_w"], p["fc1_b"] = lin(ks[1], H, H)
    p["me_w"], p["me_b"] = lin(ks[2], H, H)
    p["ve_w"], p["ve_b"] = lin(ks[3], H, H)
    p["md_w"], p["md_b"] = lin(ks[4], H, M)
    p["vd_w"], p["vd_b"] = lin(ks[5], H, M)
    p["w_w"], p["w_b"] = lin(ks[6], 3 * H, M)
    for i, (name, n) in enumerate(
        (("bn", H), ("bn1", H), ("bn2", H), ("bn3", H), ("bn4", 3 * H))
    ):
        kg, kb = jax.random.split(ks[7 + i])
        p[name + "_g"] = 1.0 + 0.1 * jax.random.normal(kg, (1, n), f32)
        p[name + "_b"] = 0.1 * jax.random.normal(kb, (1, n), f32)
    return p


def parallel_gaussian_ref(x, params):
    def bn(h, g, b):
        mu = h.mean(axis=0, keepdims=True)
        v = ((h - mu) ** 2).mean(axis=0, keepdims=True)
        return (h - mu) / jnp.sqrt(v + BN_EPS) * g + b

    def lin(h, w, b):
        return h @ w + b

    h = jnp.maximum(bn(lin(x, params["fc_w"], params["fc_b"]),
                       params["bn_g"], params["bn_b"]), 0.0)
    g = jnp.maximum(bn(lin(h, params["fc1_w"], params["fc1_b"]),
                       params["bn1_g"], params["bn1_b"]), 0.0)
    mean_h = jnp.maximum(bn(lin(g, params["me_w"], params["me_b"]),
                            params["bn2_g"], params["bn2_b"]), 0.0)
    var_h = jnp.maximum(bn(lin(g, params["ve_w"], params["ve_b"]),
                           params["bn3_g"], params["bn3_b"]), 0.0)
    y = bn(jnp.concatenate((mean_h, var_h, g), axis=1),
           params["bn4_g"], params["bn4_b"])
    weight = jax.nn.softmax(lin(y, params["w_w"], params["w_b"]) + 1e-6, axis=1)
    mean = lin(mean_h, params["md_w"], params["md_b"])
    var = jnp.exp(lin(var_h, params["vd_w"], params["vd_b"]) + 1e-6)
    return mean, var, weight


if __name__ == "__main__":
    N, B, INPUT, HIDDEN, MIX = 2, 8, 16, 32, 3   # N independent (B, INPUT) problems

    key = jax.random.PRNGKey(0)
    k_x, k_p = jax.random.split(key)
    x = jax.random.normal(k_x, (N, B, INPUT), jnp.float32)
    params = init_params(k_p, INPUT, HIDDEN, MIX)

    w_slab, v_slab = jax.block_until_ready(pack_params(params))   # one-time packing

    mean, var, weight = parallel_gaussian(x, w_slab, v_slab,
                                          hidden_size=HIDDEN, mixture_num=MIX)
    jax.block_until_ready((mean, var, weight))
    assert mean.shape == (N, B, MIX) and var.shape == (N, B, MIX)
    assert weight.shape == (N, B, MIX)

    # Check against the full (un-simplified) f32 reference, per problem.
    # Tolerances account for the intentional bf16-at-the-MXU mixed precision
    # (f32 accumulation); structural properties are checked tightly.
    for i in range(N):
        m_r, v_r, w_r = parallel_gaussian_ref(x[i], params)
        assert jnp.allclose(mean[i], m_r, atol=5e-2, rtol=5e-2)
        assert jnp.allclose(var[i], v_r, atol=5e-2, rtol=1e-1)
        assert jnp.allclose(weight[i], w_r, atol=5e-2)
    assert bool(jnp.all(var > 0.0))
    # exact softmax divide => mixture weights sum to 1 to f32 precision
    assert jnp.allclose(weight.sum(axis=-1), 1.0, atol=1e-5)

    # Single-problem (B, INPUT) path must agree with the stacked path.
    m0, v0, w0 = parallel_gaussian(x[0], w_slab, v_slab,
                                   hidden_size=HIDDEN, mixture_num=MIX)
    jax.block_until_ready((m0, v0, w0))
    assert m0.shape == (B, MIX)
    assert jnp.allclose(m0, mean[0], atol=1e-4, rtol=1e-4)
    assert jnp.allclose(v0, var[0], atol=1e-4, rtol=1e-4)
    assert jnp.allclose(w0, weight[0], atol=1e-4, rtol=1e-4)

    print("KERNEL_OK")
</pallas_src>

<mosaic_0001>
module attributes {stable_mosaic.version = 11 : i64} {
  func.func @_parallel_gaussian_kernel(%arg0: i32, %arg1: memref<1x8x16xf32, #tpu.memory_space<vmem>>, %arg2: memref<240x128xbf16, #tpu.memory_space<vmem>>, %arg3: memref<16x128xf32, #tpu.memory_space<vmem>>, %arg4: memref<1x8x9xf32, #tpu.memory_space<vmem>>) attributes {dimension_semantics = [#tpu.dimension_semantics<parallel>], iteration_bounds = array<i64: 2>, scalar_prefetch = 0 : i64, scratch_operands = 0 : i64, tpu.core_type = #tpu.core_type<tc>, window_params = [{transform_indices = @transform_0, window_bounds = array<i64: 1, 8, 16>}, {pipeline_mode = #tpu.pipeline_mode<synchronous>, transform_indices = @transform_1, window_bounds = array<i64: 240, 128>}, {pipeline_mode = #tpu.pipeline_mode<synchronous>, transform_indices = @transform_2, window_bounds = array<i64: 16, 128>}, {transform_indices = @transform_3, window_bounds = array<i64: 1, 8, 9>}]} {
    %c0 = arith.constant 0 : index
    %c0_0 = arith.constant 0 : index
    %c0_1 = arith.constant 0 : index
    %0 = vector.load %arg1[%c0, %c0_0, %c0_1] : memref<1x8x16xf32, #tpu.memory_space<vmem>>, vector<1x8x16xf32>
    %1 = vector.shape_cast %0 : vector<1x8x16xf32> to vector<8x16xf32>
    %2 = arith.truncf %1 : vector<8x16xf32> to vector<8x16xbf16>
    %c0_2 = arith.constant 0 : index
    %c0_3 = arith.constant 0 : index
    %3 = vector.load %arg2[%c0_2, %c0_3] : memref<240x128xbf16, #tpu.memory_space<vmem>>, vector<16x32xbf16>
    %cst = arith.constant dense<0.000000e+00> : vector<8x32xf32>
    %4 = tpu.matmul %2, %3, %cst {dimension_numbers = #tpu.dot_dimension_numbers<[1], [0], [0], [1], [0, 0, 1, 1], [], []>} : vector<8x16xbf16>, vector<16x32xbf16>, vector<8x32xf32> -> vector<8x32xf32>
    %cst_4 = arith.constant dense<0.000000e+00> : vector<32xf32>
    %5 = vector.multi_reduction <add>, %4, %cst_4 [0] : vector<8x32xf32> to vector<32xf32>
    %6 = vector.shape_cast %5 : vector<32xf32> to vector<1x32xf32>
    %7 = arith.mulf %4, %4 : vector<8x32xf32>
    %cst_5 = arith.constant dense<0.000000e+00> : vector<32xf32>
    %8 = vector.multi_reduction <add>, %7, %cst_5 [0] : vector<8x32xf32> to vector<32xf32>
    %9 = vector.shape_cast %8 : vector<32xf32> to vector<1x32xf32>
    %cst_6 = arith.constant 1.250000e-01 : f32
    %10 = vector.broadcast %cst_6 : f32 to vector<1x32xf32>
    %11 = arith.mulf %6, %10 : vector<1x32xf32>
    %cst_7 = arith.constant 1.250000e-01 : f32
    %12 = vector.broadcast %cst_7 : f32 to vector<1x32xf32>
    %13 = arith.mulf %9, %12 : vector<1x32xf32>
    %14 = arith.mulf %11, %11 : vector<1x32xf32>
    %15 = arith.subf %13, %14 : vector<1x32xf32>
    %cst_8 = arith.constant 9.99999974E-6 : f32
    %16 = vector.broadcast %cst_8 : f32 to vector<1x32xf32>
    %17 = arith.addf %15, %16 : vector<1x32xf32>
    %18 = math.rsqrt %17 : vector<1x32xf32>
    %c0_9 = arith.constant 0 : index
    %c0_10 = arith.constant 0 : index
    %19 = vector.load %arg3[%c0_9, %c0_10] : memref<16x128xf32, #tpu.memory_space<vmem>>, vector<1x32xf32>
    %20 = arith.mulf %18, %19 : vector<1x32xf32>
    %21 = vector.broadcast %11 : vector<1x32xf32> to vector<8x32xf32>
    %22 = arith.subf %4, %21 : vector<8x32xf32>
    %23 = vector.broadcast %20 : vector<1x32xf32> to vector<8x32xf32>
    %24 = arith.mulf %22, %23 : vector<8x32xf32>
    %c1 = arith.constant 1 : index
    %c0_11 = arith.constant 0 : index
    %25 = vector.load %arg3[%c1, %c0_11] : memref<16x128xf32, #tpu.memory_space<vmem>>, vector<1x32xf32>
    %26 = vector.broadcast %25 : vector<1x32xf32> to vector<8x32xf32>
    %27 = arith.addf %24, %26 : vector<8x32xf32>
    %cst_12 = arith.constant 0.000000e+00 : f32
    %28 = vector.broadcast %cst_12 : f32 to vector<8x32xf32>
    %29 = arith.maximumf %27, %28 : vector<8x32xf32>
    %30 = arith.truncf %29 : vector<8x32xf32> to vector<8x32xbf16>
    %c16 = arith.constant 16 : index
    %c0_13 = arith.constant 0 : index
    %31 = vector.load %arg2[%c16, %c0_13] : memref<240x128xbf16, #tpu.memory_space<vmem>>, vector<32x32xbf16>
    %cst_14 = arith.constant dense<0.000000e+00> : vector<8x32xf32>
    %32 = tpu.matmul %30, %31, %cst_14 {dimension_numbers = #tpu.dot_dimension_numbers<[1], [0], [0], [1], [0, 0, 1, 1], [], []>} : vector<8x32xbf16>, vector<32x32xbf16>, vector<8x32xf32> -> vector<8x32xf32>
    %cst_15 = arith.constant dense<0.000000e+00> : vector<32xf32>
    %33 = vector.multi_reduction <add>, %32, %cst_15 [0] : vector<8x32xf32> to vector<32xf32>
    %34 = vector.shape_cast %33 : vector<32xf32> to vector<1x32xf32>
    %35 = arith.mulf %32, %32 : vector<8x32xf32>
    %cst_16 = arith.constant dense<0.000000e+00> : vector<32xf32>
    %36 = vector.multi_reduction <add>, %35, %cst_16 [0] : vector<8x32xf32> to vector<32xf32>
    %37 = vector.shape_cast %36 : vector<32xf32> to vector<1x32xf32>
    %cst_17 = arith.constant 1.250000e-01 : f32
    %38 = vector.broadcast %cst_17 : f32 to vector<1x32xf32>
    %39 = arith.mulf %34, %38 : vector<1x32xf32>
    %cst_18 = arith.constant 1.250000e-01 : f32
    %40 = vector.broadcast %cst_18 : f32 to vector<1x32xf32>
    %41 = arith.mulf %37, %40 : vector<1x32xf32>
    %42 = arith.mulf %39, %39 : vector<1x32xf32>
    %43 = arith.subf %41, %42 : vector<1x32xf32>
    %cst_19 = arith.constant 9.99999974E-6 : f32
    %44 = vector.broadcast %cst_19 : f32 to vector<1x32xf32>
    %45 = arith.addf %43, %44 : vector<1x32xf32>
    %46 = math.rsqrt %45 : vector<1x32xf32>
    %c2 = arith.constant 2 : index
    %c0_20 = arith.constant 0 : index
    %47 = vector.load %arg3[%c2, %c0_20] : memref<16x128xf32, #tpu.memory_space<vmem>>, vector<1x32xf32>
    %48 = arith.mulf %46, %47 : vector<1x32xf32>
    %49 = vector.broadcast %39 : vector<1x32xf32> to vector<8x32xf32>
    %50 = arith.subf %32, %49 : vector<8x32xf32>
    %51 = vector.broadcast %48 : vector<1x32xf32> to vector<8x32xf32>
    %52 = arith.mulf %50, %51 : vector<8x32xf32>
    %c3 = arith.constant 3 : index
    %c0_21 = arith.constant 0 : index
    %53 = vector.load %arg3[%c3, %c0_21] : memref<16x128xf32, #tpu.memory_space<vmem>>, vector<1x32xf32>
    %54 = vector.broadcast %53 : vector<1x32xf32> to vector<8x32xf32>
    %55 = arith.addf %52, %54 : vector<8x32xf32>
    %cst_22 = arith.constant 0.000000e+00 : f32
    %56 = vector.broadcast %cst_22 : f32 to vector<8x32xf32>
    %57 = arith.maximumf %55, %56 : vector<8x32xf32>
    %58 = arith.truncf %57 : vector<8x32xf32> to vector<8x32xbf16>
    %c48 = arith.constant 48 : index
    %c0_23 = arith.constant 0 : index
    %59 = vector.load %arg2[%c48, %c0_23] : memref<240x128xbf16, #tpu.memory_space<vmem>>, vector<32x64xbf16>
    %cst_24 = arith.constant dense<0.000000e+00> : vector<8x64xf32>
    %60 = tpu.matmul %58, %59, %cst_24 {dimension_numbers = #tpu.dot_dimension_numbers<[1], [0], [0], [1], [0, 0, 1, 1], [], []>} : vector<8x32xbf16>, vector<32x64xbf16>, vector<8x64xf32> -> vector<8x64xf32>
    %cst_25 = arith.constant dense<0.000000e+00> : vector<64xf32>
    %61 = vector.multi_reduction <add>, %60, %cst_25 [0] : vector<8x64xf32> to vector<64xf32>
    %62 = vector.shape_cast %61 : vector<64xf32> to vector<1x64xf32>
    %63 = arith.mulf %60, %60 : vector<8x64xf32>
    %cst_26 = arith.constant dense<0.000000e+00> : vector<64xf32>
    %64 = vector.multi_reduction <add>, %63, %cst_26 [0] : vector<8x64xf32> to vector<64xf32>
    %65 = vector.shape_cast %64 : vector<64xf32> to vector<1x64xf32>
    %cst_27 = arith.constant 1.250000e-01 : f32
    %66 = vector.broadcast %cst_27 : f32 to vector<1x64xf32>
    %67 = arith.mulf %62, %66 : vector<1x64xf32>
    %cst_28 = arith.constant 1.250000e-01 : f32
    %68 = vector.broadcast %cst_28 : f32 to vector<1x64xf32>
    %69 = arith.mulf %65, %68 : vector<1x64xf32>
    %70 = arith.mulf %67, %67 : vector<1x64xf32>
    %71 = arith.subf %69, %70 : vector<1x64xf32>
    %cst_29 = arith.constant 9.99999974E-6 : f32
    %72 = vector.broadcast %cst_29 : f32 to vector<1x64xf32>
    %73 = arith.addf %71, %72 : vector<1x64xf32>
    %74 = math.rsqrt %73 : vector<1x64xf32>
    %c4 = arith.constant 4 : index
    %c0_30 = arith.constant 0 : index
    %75 = vector.load %arg3[%c4, %c0_30] : memref<16x128xf32, #tpu.memory_space<vmem>>, vector<1x64xf32>
    %76 = arith.mulf %74, %75 : vector<1x64xf32>
    %77 = vector.broadcast %67 : vector<1x64xf32> to vector<8x64xf32>
    %78 = arith.subf %60, %77 : vector<8x64xf32>
    %79 = vector.broadcast %76 : vector<1x64xf32> to vector<8x64xf32>
    %80 = arith.mulf %78, %79 : vector<8x64xf32>
    %c5 = arith.constant 5 : index
    %c0_31 = arith.constant 0 : index
    %81 = vector.load %arg3[%c5, %c0_31] : memref<16x128xf32, #tpu.memory_space<vmem>>, vector<1x64xf32>
    %82 = vector.broadcast %81 : vector<1x64xf32> to vector<8x64xf32>
    %83 = arith.addf %80, %82 : vector<8x64xf32>
    %cst_32 = arith.constant 0.000000e+00 : f32
    %84 = vector.broadcast %cst_32 : f32 to vector<8x64xf32>
    %85 = arith.maximumf %83, %84 : vector<8x64xf32>
    %86 = tpu.concatenate %85, %57 in 1 : vector<8x64xf32>, vector<8x32xf32> -> vector<8x96xf32>
    %cst_33 = arith.constant dense<0.000000e+00> : vector<96xf32>
    %87 = vector.multi_reduction <add>, %86, %cst_33 [0] : vector<8x96xf32> to vector<96xf32>
    %88 = vector.shape_cast %87 : vector<96xf32> to vector<1x96xf32>
    %89 = arith.mulf %86, %86 : vector<8x96xf32>
    %cst_34 = arith.constant dense<0.000000e+00> : vector<96xf32>
    %90 = vector.multi_reduction <add>, %89, %cst_34 [0] : vector<8x96xf32> to vector<96xf32>
    %91 = vector.shape_cast %90 : vector<96xf32> to vector<1x96xf32>
    %cst_35 = arith.constant 1.250000e-01 : f32
    %92 = vector.broadcast %cst_35 : f32 to vector<1x96xf32>
    %93 = arith.mulf %88, %92 : vector<1x96xf32>
    %cst_36 = arith.constant 1.250000e-01 : f32
    %94 = vector.broadcast %cst_36 : f32 to vector<1x96xf32>
    %95 = arith.mulf %91, %94 : vector<1x96xf32>
    %96 = arith.mulf %93, %93 : vector<1x96xf32>
    %97 = arith.subf %95, %96 : vector<1x96xf32>
    %cst_37 = arith.constant 9.99999974E-6 : f32
    %98 = vector.broadcast %cst_37 : f32 to vector<1x96xf32>
    %99 = arith.addf %97, %98 : vector<1x96xf32>
    %100 = math.rsqrt %99 : vector<1x96xf32>
    %c6 = arith.constant 6 : index
    %c0_38 = arith.constant 0 : index
    %101 = vector.load %arg3[%c6, %c0_38] : memref<16x128xf32, #tpu.memory_space<vmem>>, vector<1x96xf32>
    %102 = arith.mulf %100, %101 : vector<1x96xf32>
    %103 = vector.broadcast %93 : vector<1x96xf32> to vector<8x96xf32>
    %104 = arith.subf %86, %103 : vector<8x96xf32>
    %105 = vector.broadcast %102 : vector<1x96xf32> to vector<8x96xf32>
    %106 = arith.mulf %104, %105 : vector<8x96xf32>
    %c7 = arith.constant 7 : index
    %c0_39 = arith.constant 0 : index
    %107 = vector.load %arg3[%c7, %c0_39] : memref<16x128xf32, #tpu.memory_space<vmem>>, vector<1x96xf32>
    %108 = vector.broadcast %107 : vector<1x96xf32> to vector<8x96xf32>
    %109 = arith.addf %106, %108 : vector<8x96xf32>
    %110 = arith.truncf %109 : vector<8x96xf32> to vector<8x96xbf16>
    %c80 = arith.constant 80 : index
    %c0_40 = arith.constant 0 : index
    %111 = vector.load %arg2[%c80, %c0_40] : memref<240x128xbf16, #tpu.memory_space<vmem>>, vector<96x3xbf16>
    %cst_41 = arith.constant dense<0.000000e+00> : vector<8x3xf32>
    %112 = tpu.matmul %110, %111, %cst_41 {dimension_numbers = #tpu.dot_dimension_numbers<[1], [0], [0], [1], [0, 0, 1, 1], [], []>} : vector<8x96xbf16>, vector<96x3xbf16>, vector<8x3xf32> -> vector<8x3xf32>
    %c8 = arith.constant 8 : index
    %c0_42 = arith.constant 0 : index
    %113 = vector.load %arg3[%c8, %c0_42] : memref<16x128xf32, #tpu.memory_space<vmem>>, vector<1x3xf32>
    %114 = vector.broadcast %113 : vector<1x3xf32> to vector<8x3xf32>
    %115 = arith.addf %112, %114 : vector<8x3xf32>
    %cst_43 = arith.constant dense<0xFF800000> : vector<8xf32>
    %116 = vector.multi_reduction <maximumf>, %115, %cst_43 [1] : vector<8x3xf32> to vector<8xf32>
    %117 = vector.shape_cast %116 : vector<8xf32> to vector<8x1xf32>
    %118 = vector.broadcast %117 : vector<8x1xf32> to vector<8x3xf32>
    %119 = arith.subf %115, %118 : vector<8x3xf32>
    %120 = math.exp %119 : vector<8x3xf32>
    %cst_44 = arith.constant dense<0.000000e+00> : vector<8xf32>
    %121 = vector.multi_reduction <add>, %120, %cst_44 [1] : vector<8x3xf32> to vector<8xf32>
    %122 = vector.shape_cast %121 : vector<8xf32> to vector<8x1xf32>
    %123 = vector.broadcast %122 : vector<8x1xf32> to vector<8x3xf32>
    %124 = arith.divf %120, %123 : vector<8x3xf32>
    %125 = arith.truncf %85 : vector<8x64xf32> to vector<8x64xbf16>
    %c176 = arith.constant 176 : index
    %c0_45 = arith.constant 0 : index
    %126 = vector.load %arg2[%c176, %c0_45] : memref<240x128xbf16, #tpu.memory_space<vmem>>, vector<64x6xbf16>
    %cst_46 = arith.constant dense<0.000000e+00> : vector<8x6xf32>
    %127 = tpu.matmul %125, %126, %cst_46 {dimension_numbers = #tpu.dot_dimension_numbers<[1], [0], [0], [1], [0, 0, 1, 1], [], []>} : vector<8x64xbf16>, vector<64x6xbf16>, vector<8x6xf32> -> vector<8x6xf32>
    %c9 = arith.constant 9 : index
    %c0_47 = arith.constant 0 : index
    %128 = vector.load %arg3[%c9, %c0_47] : memref<16x128xf32, #tpu.memory_space<vmem>>, vector<1x6xf32>
    %129 = vector.broadcast %128 : vector<1x6xf32> to vector<8x6xf32>
    %130 = arith.addf %127, %129 : vector<8x6xf32>
    %131 = vector.extract_strided_slice %130 {offsets = [0, 0], sizes = [8, 3], strides = [1, 1]} : vector<8x6xf32> to vector<8x3xf32>
    %c0_48 = arith.constant 0 : index
    %c0_49 = arith.constant 0 : index
    %c0_50 = arith.constant 0 : index
    %132 = vector.load %arg4[%c0_48, %c0_49, %c0_50] : memref<1x8x9xf32, #tpu.memory_space<vmem>>, vector<1x8x3xf32>
    %133 = vector.shape_cast %132 : vector<1x8x3xf32> to vector<8x3xf32>
    %134 = vector.shape_cast %131 : vector<8x3xf32> to vector<1x8x3xf32>
    tpu.vector_store %arg4[%c0_48, %c0_49, %c0_50], %134 {strides = array<i32>} : memref<1x8x9xf32, #tpu.memory_space<vmem>>, vector<1x8x3xf32>,
    %135 = vector.extract_strided_slice %130 {offsets = [0, 3], sizes = [8, 3], strides = [1, 1]} : vector<8x6xf32> to vector<8x3xf32>
    %136 = math.exp %135 : vector<8x3xf32>
    %c0_51 = arith.constant 0 : index
    %c0_52 = arith.constant 0 : index
    %c3_53 = arith.constant 3 : index
    %137 = vector.load %arg4[%c0_51, %c0_52, %c3_53] : memref<1x8x9xf32, #tpu.memory_space<vmem>>, vector<1x8x3xf32>
    %138 = vector.shape_cast %137 : vector<1x8x3xf32> to vector<8x3xf32>
    %139 = vector.shape_cast %136 : vector<8x3xf32> to vector<1x8x3xf32>
    tpu.vector_store %arg4[%c0_51, %c0_52, %c3_53], %139 {strides = array<i32>} : memref<1x8x9xf32, #tpu.memory_space<vmem>>, vector<1x8x3xf32>,
    %c0_54 = arith.constant 0 : index
    %c0_55 = arith.constant 0 : index
    %c6_56 = arith.constant 6 : index
    %140 = vector.load %arg4[%c0_54, %c0_55, %c6_56] : memref<1x8x9xf32, #tpu.memory_space<vmem>>, vector<1x8x3xf32>
    %141 = vector.shape_cast %140 : vector<1x8x3xf32> to vector<8x3xf32>
    %142 = vector.shape_cast %124 : vector<8x3xf32> to vector<1x8x3xf32>
    tpu.vector_store %arg4[%c0_54, %c0_55, %c6_56], %142 {strides = array<i32>} : memref<1x8x9xf32, #tpu.memory_space<vmem>>, vector<1x8x3xf32>,
    return
  }
  func.func @transform_0(%arg0: i32) -> (i32, i32, i32) {
    %c0_i32 = arith.constant 0 : i32
    %c0_i32_0 = arith.constant 0 : i32
    %c0_i32_1 = arith.constant 0 : i32
    return %arg0, %c0_i32, %c0_i32_0 : i32, i32, i32
  }
  func.func @transform_1(%arg0: i32) -> (i32, i32) {
    %c0_i32 = arith.constant 0 : i32
    %c0_i32_0 = arith.constant 0 : i32
    %c0_i32_1 = arith.constant 0 : i32
    return %c0_i32, %c0_i32_0 : i32, i32
  }
  func.func @transform_2(%arg0: i32) -> (i32, i32) {
    %c0_i32 = arith.constant 0 : i32
    %c0_i32_0 = arith.constant 0 : i32
    %c0_i32_1 = arith.constant 0 : i32
    return %c0_i32, %c0_i32_0 : i32, i32
  }
  func.func @transform_3(%arg0: i32) -> (i32, i32, i32) {
    %c0_i32 = arith.constant 0 : i32
    %c0_i32_0 = arith.constant 0 : i32
    %c0_i32_1 = arith.constant 0 : i32
    return %arg0, %c0_i32, %c0_i32_0 : i32, i32, i32
  }
}

</mosaic_0001>

<bundles_post_ra>
// kernel: parallel_gaussian.1
= control target key start
LH: loop header
LB: loop body
LE: loop exit
PB: predicated region body
PF: predicated region fallthrough
CT: control target
= control target key end

     0   :  { %8 = vsyncpa [#allocation3], 0  ;;  %s1364_s0 = inlined_call_operand.hbm [shape: f32[2,8,16], index: 0, kind: input, shape index: {}]   ;;  %s1365_s1 = inlined_call_operand.hbm [shape: bf16[240,128], index: 1, kind: input, shape index: {}]   ;;  %s1366_s2 = inlined_call_operand.hbm [shape: f32[16,128], index: 2, kind: input, shape index: {}]   ;;  %s1367_s3 = inlined_call_operand.vmem [shape: f32[2,8,9], index: 3, kind: output, shape index: {}]  }
   0x1   :  { %10 = vsyncpa [#allocation3 + $0x1], 0 }
   0x2   :  { %11 = vsyncpa [#allocation5], 0  ;;  %s1184_s12 = smov 0   ;;  %s1186_s13 = smov 0  }
   0x3   :  { %s1188_s14 = smov 0   ;;  %s1190_s15 = smov 0  }
   0x4 LB: > { %s1203_s16 = sadd.s32 4294967295, %s1151_s15   ;;  %p37_p0 = scmp.ne.s32.totalorder %s1143_s13, %s1139_s12  ;;  %s1151_s15 = sphi %s1190_s15, %s1382_s15   ;;  %s1147_s14 = sphi %s1188_s14, %s1381_s14   ;;  %s1143_s13 = sphi %s1186_s13, %s1380_s13   ;;  %s1139_s12 = sphi %s1184_s12, %s1379_s12  }
   0x5   : > { %p1368_p1 = scmp.eq.s32.totalorder %s1203_s16, 0  ;;  %p827_p2 = scmp.ge.s32.totalorder %s1151_s15, 1 }
   0x6   : > { %p116_p3 = scmp.lt.s32.totalorder %s1151_s15, 3  ;;  %s1153_s19 = smov [#allocation4]  }
   0x7   : > { %p1211_p4 = por %p1368_p1, %p37_p0  ;;  %s128_s20 = sshll.u32 %s1153_s19, 4  ;;  %s129_s20 = int_to_ptr.vmem [resolvable:$true] %s128_s20 }
   0x8   : > { %p1215_p5 = pnand %p827_p2, %p116_p3  ;;  %s1154_s22 = smov [#allocation6]  }
   0x9   : > { %s1371_s17 = scalar_select %p1211_p4, 1, 0 }
   0xa   : > { %s1372_s18 = scalar_select %p1215_p5, 1, 0 }
   0xb   : > { %p946_p6 = pneg %p1215_p5  ;;  %s141_s23 = sshll.u32 %s1154_s22, 4  ;;  %s142_s23 = int_to_ptr.vmem [resolvable:$true] %s141_s23 }
   0xc   : > { %s1044_s24 = scalar_lea.vmem %s129_s20, 1920  ;;  %p1052_p12 = scmp.lt.s32.totalorder %s129_s20, %s129_s20 }
   0xd   : > { %p1223_p7 = pnand %p946_p6, %p1368_p1  ;;  %p1045_p9 = scmp.ne.s32.totalorder %s129_s20, %s1044_s24 }
   0xe   : > { %p1053_p13 = scmp.lt.s32.totalorder %s1044_s24, %s1044_s24 }
   0xf   : > { %p1035_p8 = pneg %p1223_p7 }
  0x10   : > { %p1054_p0 = por %p1053_p13, %p1052_p12 }
  0x11   : > { %p1047_p10 = pnand %p1045_p9, %p1035_p8 }
  0x13   : > { %p1048_p11 = pneg %p1047_p10 }
  0x15   : > { %p1055_p2 = pnand %p1054_p0, %p1048_p11 }
  0x17   : > { %1058 = shalt.err (!%p1055_p2)
}
  0x18   : > { %s1155_s25 = smov 64   ;;  %s1156_s26 = smov 4  }
  0x19   : > { %949 = dma.hbm_to_vmem [thread:$0]  (!%p1223_p7), %s1365_s1, 1920, %s129_s20, [#allocation5], %s1155_s25, %s1155_s25, %s1156_s26  }
  0x1a   : > { %s1070_s29 = scalar_lea.vmem %s142_s23, 256  ;;  %p1078_p10 = scmp.lt.s32.totalorder %s142_s23, %s142_s23 }
  0x1b   : > { %p1071_p3 = scmp.ne.s32.totalorder %s142_s23, %s1070_s29  ;;  %p1079_p1 = scmp.lt.s32.totalorder %s1070_s29, %s1070_s29 }
  0x1d   : > { %p1073_p6 = pnand %p1071_p3, %p1035_p8  ;;  %p1080_p12 = por %p1079_p1, %p1078_p10 }
  0x1f   : > { %p1074_p9 = pneg %p1073_p6 }
  0x21   : > { %p1081_p11 = pnand %p1080_p12, %p1074_p9 }
  0x23   : > { %1084 = shalt.err (!%p1081_p11)
}
  0x24   : > { %s1157_s30 = smov 128   ;;  %s1158_s4 = smov 8  }
  0x25   : > { %952 = dma.hbm_to_vmem [thread:$0]  (!%p1223_p7), %s1366_s2, 256, %s142_s23, [#allocation5], %s1157_s30, %s1157_s30, %s1158_s4  }
  0x26   : > { %s1246_s7 = sadd.s32 1, %s1151_s15   ;;  %s24_s9 = sadd.s32 1, %s1147_s14 }
  0x27   : > { %s21_s8 = ssub.s32 %s1151_s15, %s1246_s7  ;;  %p31_p8 = scmp.ne.s32.totalorder %s1147_s14, %s1143_s13 }
  0x28   : > { %p22_p1 = scmp.eq.s32.totalorder %s21_s8, 0  ;;  %p32_p13 = scmp.eq.s32.totalorder %s1151_s15, 0 }
  0x29   : > { %p959_p2 = scmp.lt.s32.totalorder %s1151_s15, 2  ;;  %s155_s11 = sand.u32 1, %s1147_s14  }
  0x2a   : > { %s1255_s10 = scalar_select %p22_p1, %s1147_s14, %s24_s9  }
  0x2b   : > { %p33_p0 = por %p32_p13, %p31_p8  ;;  %s832_s12 = sshll.u32 %s1151_s15, 7 }
  0x2c   : > { %s831_s19 = sshll.u32 %s155_s11, 3  ;;  %s1263_s22 = scalar_lea.hbm %s1364_s0, %s832_s12 }
  0x2d   : > { %s159_s23 = scalar_lea.vmem [#allocation2], %s831_s19  ;;  %p1265_p7 = pnand %p959_p2, %p33_p0 }
  0x2e   : > { %s166_s24 = sshll.u32 %s159_s23, 4  ;;  %s156_s26 = scalar_lea.sflag [#allocation3], %s155_s11  ;;  %s167_s24 = int_to_ptr.vmem [resolvable:$true] %s166_s24 }
  0x2f   : > { %s1085_s27 = scalar_lea.hbm %s1263_s22, 128  ;;  %p1087_p6 = pneg %p1265_p7 }
  0x30   : > { %p1086_p3 = scmp.ne.s32.totalorder %s1263_s22, %s1085_s27  ;;  %s1090_s29 = scalar_lea.hbm %s1364_s0, 256 }
  0x31   : > { %p1091_p12 = scmp.lt.s32.totalorder %s1263_s22, %s1364_s0  ;;  %p1092_p11 = scmp.lt.s32.totalorder %s1090_s29, %s1085_s27 }
  0x32   : > { %p1088_p9 = pnand %p1087_p6, %p1086_p3 }
  0x33   : > { %p1093_p1 = por %p1092_p11, %p1091_p12 }
  0x34   : > { %p1089_p10 = pneg %p1088_p9 }
  0x36   : > { %p1094_p8 = pnand %p1093_p1, %p1089_p10 }
  0x38   : > { %1097 = shalt.err (!%p1094_p8)
}
  0x39   : > { %s1098_s5 = scalar_lea.vmem %s167_s24, 128  ;;  %s1159_s6 = smov [#allocation2]  }
  0x3a   : > { %p1099_p13 = scmp.ne.s32.totalorder %s167_s24, %s1098_s5  ;;  %s1103_s8 = sshll.u32 %s1159_s6, 4  ;;  %s1104_s8 = int_to_ptr.vmem [resolvable:$false] %s1103_s8 }
  0x3b   : > { %s1105_s9 = scalar_lea.vmem %s1104_s8, 256  ;;  %p1106_p3 = scmp.lt.s32.totalorder %s167_s24, %s1104_s8 }
  0x3c   : > { %p1101_p0 = pnand %p1099_p13, %p1087_p6  ;;  %p1107_p9 = scmp.lt.s32.totalorder %s1105_s9, %s1098_s5 }
  0x3e   : > { %p1102_p2 = pneg %p1101_p0  ;;  %p1108_p4 = por %p1107_p9, %p1106_p3 }
  0x40   : > { %p1109_p5 = pnand %p1108_p4, %p1102_p2 }
  0x42   : > { %1112 = shalt.err (!%p1109_p5)
}
  0x43   : > { %956 = dma.hbm_to_vmem [thread:$0]  (!%p1265_p7), %s1263_s22, 128, %s167_s24, %s156_s26  }
  0x44   : > { %p1375_p10 = scmp.ne.s32.totalorder %s1372_s18, 0 }
  0x45   : > { %s177_s11 = sand.u32 (!%p1375_p10), 1, %s1143_s13   ;;  %p1376_p6 = scmp.ne.s32.totalorder (!%p1375_p10), %s1371_s17, 0 }
  0x46   : > { %175 = sbr.rel (%p1375_p10) target bundleno = 1472 (0x5c0), region = 32  ;;  %s834_s12 = sshll.u32 (!%p1375_p10), %s177_s11, 3 }
  0x47   : > { %s178_s19 = scalar_lea.sflag (!%p1375_p10), [#allocation3], %s177_s11  ;;  %s181_s20 = scalar_lea.vmem (!%p1375_p10), [#allocation2], %s834_s12 }
  0x4b   : > { %1130 = dma.done.wait (%p1376_p6), %s178_s19, 128  }
  0x4c   : > { %1132 = vsyncadd (%p1376_p6), %s178_s19, 4294967168  ;;  %p1377_p4 = scmp.eq.s32.totalorder %s1203_s16, 0 }
  0x4e   : > { %1134 = dma.done.wait (%p1377_p4), [#allocation5], 2176   ;;  %p1378_p5 = pmov %p1377_p4 }
  0x4f   : > { %v1160_v0 = vmov 0.0   ;;  %vm1161_vm0 = vmmov 0   ;;  %v1004_v1 = vld [vmem:[#allocation4] sm:$0xff]   ;;  %v216_v2 = vld [vmem:[%s181_s20] sm:$0xff]  ;;  %vm226_vm1 = vcmask 130048   ;;  %v1006_v5 = vld [vmem:[#allocation4 + $0x8] sm:$0xff]   ;;  %v295_v30 = vlaneseq }
  0x50   : > { %1136 = vsyncadd (%p1378_p5), [#allocation5], 4294965120  ;;  %886 = vmatprep.subr.bf16.mxu0 %v1160_v0  ;;  %888 = vmatprep.mubr.msk.bf16.mxu0 %vm1161_vm0, %v1160_v0  ;;  %v217_v3 = vpack.c.bf16 %v216_v2, %v216_v2  ;;  %v1005_v4 = vld [vmem:[#allocation4 + $0x10] sm:$0xff]   ;;  %vm270_vm2 = vcmask 261120   ;;  %v292_v32 = vld [vmem:[#allocation6] sm:$0x1] }
  0x51   : > { %892 = vmatprep.subr.bf16.mxu1 %v1160_v0  ;;  %896 = vmatprep.mubr.msk.bf16.mxu1 %vm1161_vm0, %v1160_v0  ;;  %v296_v31 = vshrl.u32 %v295_v30, 7  ;;  %v840_v38 = vld [vmem:[#allocation6 + $0x1] ss:$0 sm:$0xff]  ;;  %v1007_v43 = vld [vmem:[#allocation4 + $0x20] sm:$0xff]   ;;  %s1162_s17 = smov 64   ;;  %vm463_vm3 = vcmask 523264  }
  0x52   : > { %887 = vmatpush3.bf16.msra.mxu0 %v1004_v1  ;;  %893 = vmatpush3.bf16.msra.mxu1 %v1005_v4  ;;  %v1008_v44 = vld [vmem:[#allocation4 + $0x18] sm:$0xff]   ;;  %vm505_vm4 = vcmask 785408   ;;  %p211_p7 = scmp.lt.s32.totalorder %s1203_s16, 1  ;;  %vm638_vm5 = vcmask 23552   ;;  %vm734_vm6 = vcmask 48152   ;;  %vm740_vm7 = vcmask 72752  }
  0x53   : > { %900 = vmatprep.subr.bf16.mxu0 %v1160_v0  ;;  %894 = vmatprep.subr.bf16.mxu1 %v1160_v0  ;;  %v1307_v33 = vsub.s32 0, %v296_v31 }
  0x54   : > { %s1384_s16 = smov (!%p211_p7, %s1203_s16), 1 }
  0x55   : > { %889 = vmatmul.mubr.msk.bf16.vlgmr.msra.gmra.mxu0 %vm226_vm1, %v217_v3  ;;  %s837_s18 = sshll.u32 %s1384_s16, 3  ;;  %s1163_s16 = smov 6  }
  0x56   : > { %904 = vmatprep.mubr.msk.bf16.mxu0 %vm1161_vm0, %v1160_v0  ;;  %895 = vmatpush3.bf16.msra.mxu1 %v1006_v5  ;;  %s1343_s23 = scalar_lea.vmem %s1367_s3, %s837_s18 }
  0x57   : > { %908 = vmatprep.subr.bf16.mxu1 %v1160_v0  ;;  %901 = vmatpush3.bf16.msra.mxu0 %v1007_v43 }
  0x58   : > { %902 = vmatprep.subr.bf16.mxu0 %v1160_v0 }
  0x5b   : > { %903 = vmatpush3.bf16.msra.mxu0 %v1008_v44 }
  0x5c   : > { %924 = vmatprep.subr.bf16.mxu0 %v1160_v0 }
 0x115   : > { %v264_v6 = vpop.f32.mrf.mxu0 }
 0x116   : > { %v271_v7 = vsel %vm270_vm2, %v264_v6, 0.0  ;;  %v278_v8 = vmul.f32 %v264_v6, %v264_v6 }
 0x117   : > { %v272_v9 = vrot.slane %v271_v7, 4  ;;  %v890_v10 = vpop.f32.mrf.mxu0 }
 0x118   : > { %v279_v11 = vsel %vm270_vm2, %v278_v8, 0.0 }
 0x119   : > { %v273_v12 = vadd.f32 %v272_v9, %v271_v7  ;;  %v280_v13 = vrot.slane %v279_v11, 4  ;;  %v267_v14 = vpop.f32.mrf.mxu0 }
 0x11b   : > { %v274_v15 = vrot.slane %v273_v12, 2  ;;  %v281_v16 = vadd.f32 %v280_v13, %v279_v11  ;;  %v891_v17 = vpop.f32.mrf.mxu0  ;;  %v844_v11 = vld [vmem:[#allocation6 + $0x3] ss:$0 sm:$0xff] }
 0x11c   : > { %v1010_v17 = vld [vmem:[#allocation4 + $0x68] sm:$0xff]  }
 0x11d   : > { %v275_v18 = vadd.f32 %v274_v15, %v273_v12  ;;  %v282_v19 = vrot.slane %v281_v16, 2 }
 0x11f   : > { %v276_v20 = vrot.slane %v275_v18, 1  ;;  %v283_v21 = vadd.f32 %v282_v19, %v281_v16  ;;  %v1009_v16 = vld [vmem:[#allocation4 + $0x70] sm:$0xff]   ;;  %v1012_v19 = vld [vmem:[#allocation4 + $0x58] sm:$0xff]  }
 0x121   : > { %v277_v22 = vadd.f32 %v276_v20, %v275_v18  ;;  %v284_v23 = vrot.slane %v283_v21, 1  ;;  %v1011_v18 = vld [vmem:[#allocation4 + $0x60] sm:$0xff]   ;;  %v1013_v20 = vld [vmem:[#allocation4 + $0x50] sm:$0xff]  }
 0x123   : > { %v285_v24 = vadd.f32 %v284_v23, %v283_v21  ;;  %v286_v25 = vmul.f32 0.125, %v277_v22  ;;  %v1014_v21 = vld [vmem:[#allocation4 + $0x48] sm:$0xff]   ;;  %v1015_v22 = vld [vmem:[#allocation4 + $0x40] sm:$0xff]   ;;  %v1016_v23 = vld [vmem:[#allocation4 + $0x38] sm:$0xff]  }
 0x125   : > { %v287_v26 = vmul.f32 0.125, %v285_v24  ;;  %v288_v27 = vmul.f32 %v286_v25, %v286_v25  ;;  %v294_v36 = vsub.f32 %v264_v6, %v286_v25  ;;  %v388_v6 = vld [vmem:[#allocation6 + $0x2] sm:$0x1]  ;;  %v1017_v24 = vld [vmem:[#allocation4 + $0x30] sm:$0xff]   ;;  %v1018_v25 = vld [vmem:[#allocation4 + $0x28] sm:$0xff]  }
 0x127   : > { %v289_v28 = vsub.f32 %v287_v26, %v288_v27 }
 0x129   : > { %v290_v29 = vadd.f32 1e-05, %v289_v28 }
 0x12b   : > { %1019 = vrsqrt.f32 %v290_v29 }
 0x138   : > { %v1020_v34 = vpop.eup %1019 }
 0x139   : > { %v293_v35 = vmul.f32 %v1020_v34, %v292_v32 }
 0x13b   : > { %v298_v37 = vrot.slane %v293_v35, %v1307_v33 }
 0x13d   : > { %v299_v39 = vmul.f32 %v298_v37, %v294_v36 }
 0x13f   : > { %v305_v40 = vadd.f32 %v840_v38, %v299_v39 }
 0x141   : > { %v306_v41 = vmax.f32 %v305_v40, 0.0 }
 0x143   : > { %v307_v42 = vpack.c.bf16 %v306_v41, %v306_v41 }
 0x145   : > { %897 = vmatmul.mubr.msk.bf16.vlgmr.msra.gmra.mxu1 %vm270_vm2, %v307_v42 }
 0x146   : > { %920 = vmatprep.mubr.msk.bf16.mxu1 %vm1161_vm0, %v1160_v0  ;;  %909 = vmatpush3.bf16.msra.mxu1 %v1013_v20 }
 0x147   : > { %910 = vmatprep.subr.bf16.mxu1 %v1160_v0 }
 0x14a   : > { %911 = vmatpush3.bf16.msra.mxu1 %v1014_v21 }
 0x14b   : > { %912 = vmatprep.subr.bf16.mxu1 %v1160_v0 }
 0x14e   : > { %913 = vmatpush3.bf16.msra.mxu1 %v1015_v22 }
 0x14f   : > { %914 = vmatprep.subr.bf16.mxu1 %v1160_v0 }
 0x152   : > { %915 = vmatpush3.bf16.msra.mxu1 %v1016_v23 }
 0x153   : > { %916 = vmatprep.subr.bf16.mxu1 %v1160_v0 }
 0x156   : > { %917 = vmatpush3.bf16.msra.mxu1 %v1017_v24  ;;  %v849_v24 = vld [vmem:[#allocation6 + $0x7] ss:$0 sm:$0xff] }
 0x157   : > { %918 = vmatprep.subr.bf16.mxu1 %v1160_v0 }
 0x15a   : > { %919 = vmatpush3.bf16.msra.mxu1 %v1018_v25 }
 0x205   : > { %v361_v45 = vpop.f32.mrf.mxu1 }
 0x206   : > { %v367_v46 = vsel %vm270_vm2, %v361_v45, 0.0  ;;  %v374_v47 = vmul.f32 %v361_v45, %v361_v45 }
 0x207   : > { %v368_v48 = vrot.slane %v367_v46, 4  ;;  %v898_v49 = vpop.f32.mrf.mxu1 }
 0x208   : > { %v375_v50 = vsel %vm270_vm2, %v374_v47, 0.0 }
 0x209   : > { %v369_v51 = vadd.f32 %v368_v48, %v367_v46  ;;  %v376_v52 = vrot.slane %v375_v50, 4  ;;  %v364_v53 = vpop.f32.mrf.mxu1 }
 0x20b   : > { %v370_v54 = vrot.slane %v369_v51, 2  ;;  %v377_v55 = vadd.f32 %v376_v52, %v375_v50  ;;  %v899_v56 = vpop.f32.mrf.mxu1  ;;  %v485_v50 = vld [vmem:[#allocation6 + $0x4] sm:$0x1] }
 0x20d   : > { %v371_v57 = vadd.f32 %v370_v54, %v369_v51  ;;  %v378_v58 = vrot.slane %v377_v55, 2 }
 0x20f   : > { %v372_v59 = vrot.slane %v371_v57, 1  ;;  %v379_v60 = vadd.f32 %v378_v58, %v377_v55  ;;  %v848_v55 = vld [vmem:[#allocation6 + $0x5] ss:$0 sm:$0xff] }
 0x211   : > { %v373_v61 = vadd.f32 %v372_v59, %v371_v57  ;;  %v380_v62 = vrot.slane %v379_v60, 1 }
 0x213   : > { %v381_v63 = vadd.f32 %v380_v62, %v379_v60  ;;  %v382_v1 = vmul.f32 0.125, %v373_v61 }
 0x215   : > { %v383_v2 = vmul.f32 0.125, %v381_v63  ;;  %v384_v3 = vmul.f32 %v382_v1, %v382_v1  ;;  %v390_v9 = vsub.f32 %v361_v45, %v382_v1 }
 0x217   : > { %v385_v4 = vsub.f32 %v383_v2, %v384_v3 }
 0x219   : > { %v386_v5 = vadd.f32 1e-05, %v385_v4 }
 0x21b   : > { %1021 = vrsqrt.f32 %v386_v5 }
 0x228   : > { %v1022_v7 = vpop.eup %1021 }
 0x229   : > { %v389_v8 = vmul.f32 %v1022_v7, %v388_v6 }
 0x22b   : > { %v394_v10 = vrot.slane %v389_v8, %v1307_v33 }
 0x22d   : > { %v395_v12 = vmul.f32 %v394_v10, %v390_v9 }
 0x22f   : > { %v401_v13 = vadd.f32 %v844_v11, %v395_v12 }
 0x231   : > { %v402_v14 = vmax.f32 %v401_v13, 0.0 }
 0x233   : > { %501 = vrot.lane.b32.xlu0 %v402_v14, %s1162_s17  ;;  %v403_v15 = vpack.c.bf16 %v402_v14, %v402_v14 }
 0x235   : > { %905 = vmatmul.mubr.msk.bf16.vlgmr.msra.gmra.mxu0 %vm270_vm2, %v403_v15 }
 0x236   : > { %932 = vmatprep.mubr.msk.bf16.mxu0 %vm1161_vm0, %v1160_v0  ;;  %925 = vmatpush3.bf16.msra.mxu0 %v1009_v16 }
 0x237   : > { %926 = vmatprep.subr.bf16.mxu0 %v1160_v0 }
 0x23a   : > { %927 = vmatpush3.bf16.msra.mxu0 %v1010_v17 }
 0x23b   : > { %928 = vmatprep.subr.bf16.mxu0 %v1160_v0 }
 0x23e   : > { %929 = vmatpush3.bf16.msra.mxu0 %v1011_v18 }
 0x23f   : > { %930 = vmatprep.subr.bf16.mxu0 %v1160_v0 }
 0x242   : > { %931 = vmatpush3.bf16.msra.mxu0 %v1012_v19  ;;  %v527_v19 = vld [vmem:[#allocation6 + $0x6] sm:$0x1] }
 0x2a5   : > { %v502_v59 = vpop.permute.xlu0 %501 }
 0x2f5   : > { %v457_v26 = vpop.f32.mrf.mxu0 }
 0x2f6   : > { %v464_v27 = vsel %vm463_vm3, %v457_v26, 0.0  ;;  %v471_v28 = vmul.f32 %v457_v26, %v457_v26 }
 0x2f7   : > { %v465_v29 = vrot.slane %v464_v27, 4  ;;  %v906_v30 = vpop.f32.mrf.mxu0 }
 0x2f8   : > { %v472_v31 = vsel %vm463_vm3, %v471_v28, 0.0  ;;  %v858_v28 = vld [vmem:[#allocation6 + $0x9] ss:$0 sm:$0xff] }
 0x2f9   : > { %v466_v32 = vadd.f32 %v465_v29, %v464_v27  ;;  %v473_v34 = vrot.slane %v472_v31, 4  ;;  %v460_v35 = vpop.f32.mrf.mxu0 }
 0x2fb   : > { %v467_v36 = vrot.slane %v466_v32, 2  ;;  %v474_v37 = vadd.f32 %v473_v34, %v472_v31  ;;  %v907_v38 = vpop.f32.mrf.mxu0 }
 0x2fd   : > { %v468_v39 = vadd.f32 %v467_v36, %v466_v32  ;;  %v475_v40 = vrot.slane %v474_v37, 2  ;;  %v850_v36 = vld [vmem:[#allocation6 + $0x8] ss:$0 sm:$0xff] }
 0x2ff   : > { %v469_v41 = vrot.slane %v468_v39, 1  ;;  %v476_v0 = vadd.f32 %v475_v40, %v474_v37 }
 0x301   : > { %v470_v42 = vadd.f32 %v469_v41, %v468_v39  ;;  %v477_v43 = vrot.slane %v476_v0, 1 }
 0x303   : > { %v478_v44 = vadd.f32 %v477_v43, %v476_v0  ;;  %v479_v45 = vmul.f32 0.125, %v470_v42 }
 0x305   : > { %v480_v46 = vmul.f32 0.125, %v478_v44  ;;  %v481_v47 = vmul.f32 %v479_v45, %v479_v45  ;;  %v487_v53 = vsub.f32 %v457_v26, %v479_v45 }
 0x307   : > { %v482_v48 = vsub.f32 %v480_v46, %v481_v47 }
 0x309   : > { %v483_v49 = vadd.f32 1e-05, %v482_v48 }
 0x30b   : > { %1023 = vrsqrt.f32 %v483_v49 }
 0x318   : > { %v1024_v51 = vpop.eup %1023 }
 0x319   : > { %v486_v52 = vmul.f32 %v1024_v51, %v485_v50 }
 0x31b   : > { %v491_v54 = vrot.slane %v486_v52, %v1307_v33 }
 0x31d   : > { %v492_v56 = vmul.f32 %v491_v54, %v487_v53 }
 0x31f   : > { %v498_v57 = vadd.f32 %v848_v55, %v492_v56 }
 0x321   : > { %v499_v58 = vmax.f32 %v498_v57, 0.0 }
 0x323   : > { %v650_v60 = vpack.c.bf16 %v499_v58, %v499_v58  ;;  %v504_v61 = vsel %vm463_vm3, %v499_v58, %v502_v59 }
 0x324   : > { %v506_v62 = vsel %vm505_vm4, %v504_v61, 0.0  ;;  %v513_v63 = vmul.f32 %v504_v61, %v504_v61 }
 0x325   : > { %933 = vmatmul.mubr.msk.bf16.vlgmr.msra.gmra.mxu0 %vm463_vm3, %v650_v60  ;;  %v507_v1 = vrot.slane %v506_v62, 4 }
 0x326   : > { %v514_v2 = vsel %vm505_vm4, %v513_v63, 0.0 }
 0x327   : > { %v508_v3 = vadd.f32 %v507_v1, %v506_v62  ;;  %v515_v4 = vrot.slane %v514_v2, 4 }
 0x329   : > { %v509_v5 = vrot.slane %v508_v3, 2  ;;  %v516_v6 = vadd.f32 %v515_v4, %v514_v2 }
 0x32b   : > { %v510_v7 = vadd.f32 %v509_v5, %v508_v3  ;;  %v517_v8 = vrot.slane %v516_v6, 2 }
 0x32d   : > { %v511_v9 = vrot.slane %v510_v7, 1  ;;  %v518_v10 = vadd.f32 %v517_v8, %v516_v6 }
 0x32f   : > { %v512_v11 = vadd.f32 %v511_v9, %v510_v7  ;;  %v519_v12 = vrot.slane %v518_v10, 1 }
 0x331   : > { %v520_v13 = vadd.f32 %v519_v12, %v518_v10  ;;  %v521_v14 = vmul.f32 0.125, %v512_v11 }
 0x333   : > { %v522_v15 = vmul.f32 0.125, %v520_v13  ;;  %v523_v16 = vmul.f32 %v521_v14, %v521_v14  ;;  %v529_v22 = vsub.f32 %v504_v61, %v521_v14 }
 0x335   : > { %v524_v17 = vsub.f32 %v522_v15, %v523_v16 }
 0x337   : > { %v525_v18 = vadd.f32 1e-05, %v524_v17 }
 0x339   : > { %1025 = vrsqrt.f32 %v525_v18 }
 0x346   : > { %v1026_v20 = vpop.eup %1025 }
 0x347   : > { %v528_v21 = vmul.f32 %v1026_v20, %v527_v19 }
 0x349   : > { %v533_v23 = vrot.slane %v528_v21, %v1307_v33 }
 0x34b   : > { %v534_v25 = vmul.f32 %v533_v23, %v529_v22 }
 0x34d   : > { %v540_v26 = vadd.f32 %v849_v24, %v534_v25 }
 0x34f   : > { %v541_v27 = vpack.c.bf16 %v540_v26, %v540_v26 }
 0x351   : > { %921 = vmatmul.mubr.msk.bf16.vlgmr.msra.gmra.mxu1 %vm505_vm4, %v541_v27 }
 0x3e5   : > { %v725_v29 = vpop.f32.mrf.mxu0 }
 0x3e6   : > { %v726_v33 = vadd.f32 %v858_v28, %v725_v29 }
 0x3e7   : > { %v934_v30 = vpop.f32.mrf.mxu0 }
 0x3e8   : > { %v732_v31 = vmul.f32 1.442695, %v726_v33  ;;  %731 = vst.msk [vmem:[%s1343_s23] sm:$0xff] %vm638_vm5, %v726_v33 }
 0x3e9   : > { %v728_v32 = vpop.f32.mrf.mxu0 }
 0x3ea   : > { %1027 = vpow2.f32 %v732_v31 }
 0x3eb   : > { %v935_v34 = vpop.f32.mrf.mxu0 }
 0x3f7   : > { %v1028_v35 = vpop.eup %1027 }
 0x3f8   : > { %735 = vst.msk [vmem:[%s1343_s23] sm:$0xff] %vm734_vm6, %v1028_v35 }
 0x411   : > { %v632_v37 = vpop.f32.mrf.mxu1 }
 0x412   : > { %v633_v38 = vadd.f32 %v850_v36, %v632_v37 }
 0x413   : > { %v922_v39 = vpop.f32.mrf.mxu1 }
 0x414   : > { %v639_v40 = vsel %vm638_vm5, %v633_v38, -inf }
 0x415   : > { %640 = vmax.xlane.f32.xlu0 %v639_v40  ;;  %v635_v41 = vpop.f32.mrf.mxu1 }
 0x417   : > { %v923_v0 = vpop.f32.mrf.mxu1 }
 0x49e   : > { %v641_v42 = vpop.xlane.xlu0 %640 }
 0x49f   : > { %v642_v43 = vsub.f32 %v633_v38, %v641_v42 }
 0x4a1   : > { %v643_v44 = vmul.f32 1.442695, %v642_v43 }
 0x4a3   : > { %1029 = vpow2.f32 %v643_v44 }
 0x4b0   : > { %v1030_v45 = vpop.eup %1029 }
 0x4b1   : > { %v645_v46 = vsel %vm638_vm5, %v1030_v45, 0.0 }
 0x4b2   : > { %646 = vadd.xlane.f32.xlu1 %v645_v46 }
 0x53b   : > { %v647_v47 = vpop.xlane.xlu1 %646 }
 0x53c   : > { %1031 = vrcp.f32 %v647_v47 }
 0x549   : > { %v1032_v48 = vpop.eup %1031 }
 0x54a   : > { %v649_v49 = vmul.f32 %v1032_v48, %v1030_v45 }
 0x54c   : > { %737 = vrot.lane.b32.xlu1 %v649_v49, %s1163_s16 }
 0x5be   : > { %v738_v50 = vpop.permute.xlu1 %737 }
 0x5bf   : > { %741 = vst.msk [vmem:[%s1343_s23] sm:$0xff] %vm740_vm7, %v738_v50 }
 0x5c0 PF: > { %p14_p12 = scmp.ge.s32.totalorder %s1246_s7, 4   ;;  %s1379_s12 = smov %s1143_s13 }
 0x5c1   : > { %s1380_s13 = smov %s1147_s14  ;;  %s1381_s14 = smov %s1255_s10 }
 0x5c2   : > { %s1382_s15 = smov %s1246_s7  ;;  %16 = sbr.rel (!%p14_p12) target bundleno = 4 (0x4), region = 80 }
 0x5c7   :  { %761 = vsyncpa [#allocation3], 1 }
 0x5c8   :  { %763 = vsyncpa [#allocation3 + $0x1], 1 }
 0x5c9   :  { %764 = vsyncpa [#allocation5], 1 }

</bundles_post_ra>
